<compile_context>
chip_gen: v7x
topology: tpu7x:2x2x1
jax: 0.10.0
libtpu: 0.0.40
codegen_flags: <defaults>
</compile_context>

<pallas_src>
import functools
import math

import jax
import jax.numpy as jnp
from jax.experimental import pallas as pl
from jax.experimental.pallas import tpu as pltpu


def _log_transform_kernel(x_ref, o_ref, *, c1, c2):
    # out = (log10(x) - log10(min)) * inv_range
    #     = log(x) * (inv_range / ln 10) + (-log10(min) * inv_range)
    x = x_ref[...].astype(jnp.float32)
    y = jnp.log(x) * jnp.float32(c1) + jnp.float32(c2)
    o_ref[...] = y.astype(o_ref.dtype)


def _choose_lane(n):
    # Prefer the widest lane dim that divides n exactly (no padding needed).
    for lane in (1024, 512, 256, 128):
        if n % lane == 0:
            return lane
    return 128


def log_transform(x, min=1.0, max=None):
    """Pallas TPU implementation of LogTransform.forward.

    Matches:
        if max: (log10(x) - log10(min)) / (log10(max) - log10(min))
        else:    log10(x) - log10(min)
    """
    orig_shape = x.shape
    n = x.size

    log_min = math.log10(float(min))
    if max:  # mirrors `if self._max:` truthiness in the torch module
        inv_range = 1.0 / (math.log10(float(max)) - log_min)
    else:
        inv_range = 1.0
    c1 = inv_range / math.log(10.0)
    c2 = -log_min * inv_range

    # Output in the input's floating dtype (int inputs promote to f32).
    if jnp.issubdtype(x.dtype, jnp.floating):
        out_dtype = x.dtype
    else:
        out_dtype = jnp.float32
    # TODO(synk): f64 inputs (x64 mode) are computed in f32 inside the kernel.

    lane = _choose_lane(n)
    pad = (-n) % lane
    flat = x.reshape(-1)
    if pad:
        # Single pad pass, only when numel is not a multiple of 128; pad value
        # 1.0 keeps log() well-defined in the (discarded) tail region.
        flat = jnp.pad(flat, (0, pad), constant_values=1)
    rows = (n + pad) // lane
    x2d = flat.reshape(rows, lane)

    # ~1 MiB f32 per input buffer -> <= 4 MiB total double-buffered (in + out),
    # safe on all generations without touching vmem_limit_bytes.
    tile_rows = (1 << 20) // (lane * 4)
    rows_ceil8 = pl.cdiv(rows, 8) * 8
    if tile_rows > rows_ceil8:
        tile_rows = rows_ceil8
    if tile_rows < 8:
        tile_rows = 8

    grid = (pl.cdiv(rows, tile_rows),)
    kernel = functools.partial(_log_transform_kernel, c1=c1, c2=c2)

    out2d = pl.pallas_call(
        kernel,
        out_shape=jax.ShapeDtypeStruct((rows, lane), out_dtype),
        grid=grid,
        in_specs=[pl.BlockSpec((tile_rows, lane), lambda i: (i, 0))],
        out_specs=pl.BlockSpec((tile_rows, lane), lambda i: (i, 0)),
        compiler_params=pltpu.CompilerParams(
            dimension_semantics=("parallel",),
        ),
    )(x2d)

    out = out2d.reshape(-1)
    if pad:
        out = out[:n]
    return out.reshape(orig_shape)


if __name__ == "__main__":
    key = jax.random.PRNGKey(0)
    # Small NCHW-like input, strictly positive so log10 is well-defined.
    x = jax.random.uniform(key, (2, 4, 16, 16), jnp.float32, minval=0.5, maxval=100.0)

    # Normalized branch (max given).
    y = log_transform(x, min=1.0, max=100.0)
    jax.block_until_ready(y)

    # Offset-only branch (max is None).
    y2 = log_transform(x, min=1.0, max=None)
    jax.block_until_ready(y2)

    # Correctness check against pure-JAX reference.
    ref = (jnp.log10(x) - jnp.log10(1.0)) / (jnp.log10(100.0) - jnp.log10(1.0))
    ref2 = jnp.log10(x) - jnp.log10(1.0)
    assert jnp.allclose(y, ref, atol=1e-5, rtol=1e-5)
    assert jnp.allclose(y2, ref2, atol=1e-5, rtol=1e-5)

    print("KERNEL_OK")
</pallas_src>

<mosaic_0001>
module attributes {stable_mosaic.version = 11 : i64} {
  func.func @_log_transform_kernel(%arg0: i32, %arg1: memref<8x1024xf32, #tpu.memory_space<vmem>>, %arg2: memref<8x1024xf32, #tpu.memory_space<vmem>>) attributes {dimension_semantics = [#tpu.dimension_semantics<parallel>], iteration_bounds = array<i64: 1>, scalar_prefetch = 0 : i64, scratch_operands = 0 : i64, tpu.core_type = #tpu.core_type<tc>, window_params = [{transform_indices = @transform_0, window_bounds = array<i64: 8, 1024>}, {transform_indices = @transform_1, window_bounds = array<i64: 8, 1024>}]} {
    %c0 = arith.constant 0 : index
    %c0_0 = arith.constant 0 : index
    %0 = vector.load %arg1[%c0, %c0_0] : memref<8x1024xf32, #tpu.memory_space<vmem>>, vector<8x1024xf32>
    %1 = math.log %0 : vector<8x1024xf32>
    %cst = arith.constant 0.217147246 : f32
    %2 = vector.broadcast %cst : f32 to vector<8x1024xf32>
    %3 = arith.mulf %1, %2 : vector<8x1024xf32>
    %cst_1 = arith.constant -0.000000e+00 : f32
    %4 = vector.broadcast %cst_1 : f32 to vector<8x1024xf32>
    %5 = arith.addf %3, %4 : vector<8x1024xf32>
    %c0_2 = arith.constant 0 : index
    %c0_3 = arith.constant 0 : index
    %6 = vector.load %arg2[%c0_2, %c0_3] : memref<8x1024xf32, #tpu.memory_space<vmem>>, vector<8x1024xf32>
    tpu.vector_store %arg2[%c0_2, %c0_3], %5 {strides = array<i32>} : memref<8x1024xf32, #tpu.memory_space<vmem>>, vector<8x1024xf32>,
    return
  }
  func.func @transform_0(%arg0: i32) -> (i32, i32) {
    %c0_i32 = arith.constant 0 : i32
    %c0_i32_0 = arith.constant 0 : i32
    return %arg0, %c0_i32 : i32, i32
  }
  func.func @transform_1(%arg0: i32) -> (i32, i32) {
    %c0_i32 = arith.constant 0 : i32
    %c0_i32_0 = arith.constant 0 : i32
    return %arg0, %c0_i32 : i32, i32
  }
}

</mosaic_0001>

<bundles_post_ra>
// kernel: tpu_custom_call.1
= control target key start
LH: loop header
LB: loop body
LE: loop exit
PB: predicated region body
PF: predicated region fallthrough
CT: control target
= control target key end

     0   :  { %6 = vsyncpa [#allocation3], 0  ;;  %s192_s0 = inlined_call_operand.hbm [shape: f32[2,1024], index: 0, kind: input, shape index: {}]   ;;  %s193_s1 = inlined_call_operand.hbm [shape: f32[2,1024], index: 1, kind: output, shape index: {}]  }
   0x1   :  { %7 = vsyncpa [#allocation4], 0 }
   0x2   :  { %12 = vsyncadd [#allocation3], 768  ;;  %s148_s6 = smov [#allocation2]   ;;  %s100_s10 = scalar_lea.hbm %s192_s0, 256 }
   0x3   :  { %s13_s7 = sshll.u32 %s148_s6, 4  ;;  %p101_p0 = scmp.ne.s32.totalorder %s192_s0, %s100_s10  ;;  %s14_s7 = int_to_ptr.vmem [resolvable:$true] %s13_s7 }
   0x4   :  { %p104_p1 = scmp.lt.u32.totalorder %s100_s10, %s192_s0 }
   0x6   :  { %p106_p2 = pnand %p104_p1, %p101_p0 }
   0x8   :  { %109 = shalt.err (!%p106_p2)
}
   0x9   :  { %s110_s15 = scalar_lea.vmem %s14_s7, 256  ;;  %s114_s16 = scalar_lea.vmem %s14_s7, 1024 }
   0xa   :  { %p111_p3 = scmp.ne.s32.totalorder %s14_s7, %s110_s15  ;;  %p115_p4 = scmp.lt.s32.totalorder %s14_s7, %s14_s7 }
   0xb   :  { %p116_p5 = scmp.lt.s32.totalorder %s114_s16, %s110_s15 }
   0xd   :  { %p117_p6 = por %p116_p5, %p115_p4 }
   0xf   :  { %p118_p7 = pnand %p117_p6, %p111_p3 }
  0x11   :  { %121 = shalt.err (!%p118_p7)
}
  0x12   :  { %s149_s17 = smov 256   ;;  %s150_s18 = smov 16  }
  0x13   :  { %19 = dma.hbm_to_vmem [thread:$0]  %s192_s0, 256, %s14_s7, [#allocation3], %s149_s17, %s149_s17, %s150_s18  }
  0x14   :  { %144 = dma.done.wait [#allocation3], 1024  }
  0x15   :  { %145 = vsyncadd [#allocation3], 4294966272  ;;  %v23_v0 = vld [vmem:[#allocation2] sm:$0xff]  ;;  %v24_v1 = vld [vmem:[#allocation2 + $0x8] sm:$0xff] }
  0x16   :  { %v25_v2 = vld [vmem:[#allocation2 + $0x10] sm:$0xff]  ;;  %84 = vlog2.f32 %v23_v0  ;;  %v26_v3 = vld [vmem:[#allocation2 + $0x18] sm:$0xff]  ;;  %v27_v4 = vld [vmem:[#allocation2 + $0x20] sm:$0xff] }
  0x17   :  { %86 = vlog2.f32 %v24_v1  ;;  %v28_v5 = vld [vmem:[#allocation2 + $0x28] sm:$0xff]  ;;  %v29_v6 = vld [vmem:[#allocation2 + $0x30] sm:$0xff]  ;;  %v30_v7 = vld [vmem:[#allocation2 + $0x38] sm:$0xff] }
  0x18   :  { %88 = vlog2.f32 %v25_v2 }
  0x19   :  { %90 = vlog2.f32 %v26_v3 }
  0x1a   :  { %92 = vlog2.f32 %v27_v4 }
  0x1b   :  { %94 = vlog2.f32 %v28_v5 }
  0x1c   :  { %96 = vlog2.f32 %v29_v6 }
  0x1d   :  { %98 = vlog2.f32 %v30_v7 }
  0x20   :  { %v85_v8 = vpop.eup %84 }
  0x21   :  { %v87_v9 = vpop.eup %86  ;;  %v32_v10 = vmul.f32 0.6931472, %v85_v8 }
  0x22   :  { %v89_v11 = vpop.eup %88  ;;  %v34_v12 = vmul.f32 0.6931472, %v87_v9 }
  0x23   :  { %v91_v13 = vpop.eup %90  ;;  %v47_v14 = vmul.f32 0.21714725, %v32_v10  ;;  %v36_v15 = vmul.f32 0.6931472, %v89_v11 }
  0x24   :  { %v93_v16 = vpop.eup %92  ;;  %v48_v17 = vmul.f32 0.21714725, %v34_v12  ;;  %v38_v18 = vmul.f32 0.6931472, %v91_v13 }
  0x25   :  { %v95_v19 = vpop.eup %94  ;;  %55 = vst [vmem:[#allocation5] sm:$0xff] %v47_v14  ;;  %v49_v20 = vmul.f32 0.21714725, %v36_v15  ;;  %v40_v21 = vmul.f32 0.6931472, %v93_v16 }
  0x26   :  { %v97_v22 = vpop.eup %96  ;;  %56 = vst [vmem:[#allocation5 + $0x8] sm:$0xff] %v48_v17  ;;  %v50_v23 = vmul.f32 0.21714725, %v38_v18  ;;  %v42_v24 = vmul.f32 0.6931472, %v95_v19 }
  0x27   :  { %v99_v25 = vpop.eup %98  ;;  %57 = vst [vmem:[#allocation5 + $0x10] sm:$0xff] %v49_v20  ;;  %v51_v26 = vmul.f32 0.21714725, %v40_v21  ;;  %v44_v27 = vmul.f32 0.6931472, %v97_v22 }
  0x28   :  { %58 = vst [vmem:[#allocation5 + $0x18] sm:$0xff] %v50_v23  ;;  %v52_v28 = vmul.f32 0.21714725, %v42_v24  ;;  %v46_v29 = vmul.f32 0.6931472, %v99_v25 }
  0x29   :  { %59 = vst [vmem:[#allocation5 + $0x20] sm:$0xff] %v51_v26  ;;  %v53_v30 = vmul.f32 0.21714725, %v44_v27 }
  0x2a   :  { %60 = vst [vmem:[#allocation5 + $0x28] sm:$0xff] %v52_v28  ;;  %v54_v31 = vmul.f32 0.21714725, %v46_v29 }
  0x2b   :  { %61 = vst [vmem:[#allocation5 + $0x30] sm:$0xff] %v53_v30 }
  0x2c   :  { %62 = vst [vmem:[#allocation5 + $0x38] sm:$0xff] %v54_v31 }
  0x2d   :  { %67 = vsyncadd [#allocation4], 768  ;;  %s151_s0 = smov [#allocation5]  }
  0x2e   :  { %s68_s21 = sshll.u32 %s151_s0, 4  ;;  %s69_s21 = int_to_ptr.vmem [resolvable:$true] %s68_s21 }
  0x2f   :  { %s122_s22 = scalar_lea.vmem %s69_s21, 256  ;;  %s126_s23 = scalar_lea.vmem %s69_s21, 1024 }
  0x30   :  { %p123_p8 = scmp.ne.s32.totalorder %s69_s21, %s122_s22  ;;  %p127_p9 = scmp.lt.s32.totalorder %s69_s21, %s69_s21 }
  0x31   :  { %p128_p10 = scmp.lt.s32.totalorder %s126_s23, %s122_s22 }
  0x33   :  { %p129_p11 = por %p128_p10, %p127_p9 }
  0x35   :  { %p130_p12 = pnand %p129_p11, %p123_p8 }
  0x37   :  { %133 = shalt.err (!%p130_p12)
}
  0x38   :  { %s134_s26 = scalar_lea.hbm %s193_s1, 256 }
  0x39   :  { %p135_p13 = scmp.ne.s32.totalorder %s193_s1, %s134_s26  ;;  %p138_p0 = scmp.lt.u32.totalorder %s134_s26, %s193_s1 }
  0x3b   :  { %p140_p1 = pnand %p138_p0, %p135_p13 }
  0x3d   :  { %143 = shalt.err (!%p140_p1)
}
  0x3e   :  { %74 = dma.vmem_to_hbm [thread:$0]  %s69_s21, 256, %s193_s1, [#allocation4], %s149_s17, %s149_s17, %s150_s18  }
  0x3f   :  { %146 = dma.done.wait [#allocation4], 1024  }
  0x40   :  { %147 = vsyncadd [#allocation4], 4294966272 }
  0x41   :  { %78 = vsyncpa [#allocation3], 1 }
  0x42   :  { %79 = vsyncpa [#allocation4], 1 }

</bundles_post_ra>
